<compile_context>
chip_gen: v6e
topology: v6e:2x2x1
jax: 0.10.0
libtpu: 0.0.40
codegen_flags: <defaults>
</compile_context>

<pallas_src>
import functools

import jax
import jax.numpy as jnp
from jax.experimental import pallas as pl
from jax.experimental.pallas import tpu as pltpu


def _linear_sigmoid_kernel(x_ref, w_ref, b_ref, o_ref):
    # x_ref: (TB, K) f32 VMEM tile of the input
    # w_ref: (1, K)  f32 VMEM, lane-major weight (broadcast over batch)
    # b_ref: (1, 1)  f32 SMEM bias
    # o_ref: (TB, 1) f32 VMEM output tile
    x = x_ref[...]
    w = w_ref[...]
    # GEMV with N=1: broadcast-multiply on the VPU + cross-lane sum on the XLU.
    # Keeps the weight lane-dense and avoids wasting 255/256 MXU result columns.
    y = jnp.sum(x * w, axis=-1, keepdims=True) + b_ref[0, 0]
    # exp + reciprocal both route to the EUP.
    o_ref[...] = jax.nn.sigmoid(y)


def _round_up(n, m):
    return ((n + m - 1) // m) * m


@functools.partial(jax.jit, static_argnames=("block_b",))
def discriminator_forward(x, w, b, *, block_b=256):
    """x: (B, 10000) f32, w: (1, 10000) f32 (PyTorch (out, in) layout),
    b: (1, 1) f32  ->  (B, 1) f32 = sigmoid(x @ w.T + b)."""
    B, K = x.shape
    assert w.shape == (1, K), w.shape
    assert b.shape == (1, 1), b.shape

    # Batch tile: TB=256 keeps the double-buffered x block (~2*256*K*4 ≈ 20 MiB)
    # inside a 48 MiB VMEM budget on every generation (v5e/v6e/v7x) while being
    # large enough to sit near the HBM roofline. Small batches shrink the tile
    # to the (8-aligned) batch itself so we don't pad B=2 up to 256.
    tb = min(block_b, _round_up(B, 8))
    b_pad = _round_up(B, tb)
    if b_pad != B:
        # Zero rows just produce sigmoid(bias); they are sliced off below.
        x = jnp.pad(x, ((0, b_pad - B), (0, 0)))

    grid = (b_pad // tb,)

    out = pl.pallas_call(
        _linear_sigmoid_kernel,
        out_shape=jax.ShapeDtypeStruct((b_pad, 1), jnp.float32),
        grid=grid,
        in_specs=[
            pl.BlockSpec((tb, K), lambda i: (i, 0)),                          # x tile
            pl.BlockSpec((1, K), lambda i: (0, 0)),                           # w (resident)
            pl.BlockSpec((1, 1), lambda i: (0, 0), memory_space=pltpu.SMEM),  # bias
        ],
        out_specs=pl.BlockSpec((tb, 1), lambda i: (i, 0)),
        compiler_params=pltpu.CompilerParams(
            dimension_semantics=("parallel",),      # shard batch steps across TCs (v7x)
            vmem_limit_bytes=48 * 1024 * 1024,      # covers TB=256 double-buffered on v5e too
        ),
        cost_estimate=pl.CostEstimate(
            flops=2 * b_pad * K,
            transcendentals=b_pad,
            bytes_accessed=4 * (b_pad * K + K + b_pad),
        ),
    )(x, w, b)

    return out[:B]


def init_params(key, in_features=10000, out_features=1):
    """nn.Linear default init: U(-1/sqrt(fan_in), 1/sqrt(fan_in)).
    Weight kept in PyTorch's (out_features, in_features) layout (lane-major)."""
    kw, kb = jax.random.split(key)
    bound = 1.0 / jnp.sqrt(jnp.float32(in_features))
    w = jax.random.uniform(kw, (out_features, in_features), jnp.float32, -bound, bound)
    b = jax.random.uniform(kb, (out_features, out_features), jnp.float32, -bound, bound)
    return w, b


if __name__ == "__main__":
    key = jax.random.PRNGKey(0)
    kx, kp, kx2 = jax.random.split(key, 3)

    K = 10000  # feature dim fixed by the module

    # Small-batch check (B=2): tile shrinks to 8, single grid step.
    B = 2
    x = jax.random.normal(kx, (B, K), jnp.float32)
    w, b = init_params(kp, in_features=K, out_features=1)

    z = discriminator_forward(x, w, b)
    z = jax.block_until_ready(z)
    z_ref = jax.nn.sigmoid(x @ w.T + b)
    assert z.shape == (B, 1)
    assert jnp.allclose(z, z_ref, atol=2e-5, rtol=1e-4), (z, z_ref)

    # Multi-tile + ragged-batch check (B=300, TB=128 -> grid of 3, padded tail).
    B2 = 300
    x2 = jax.random.normal(kx2, (B2, K), jnp.float32)
    z2 = discriminator_forward(x2, w, b, block_b=128)
    z2 = jax.block_until_ready(z2)
    z2_ref = jax.nn.sigmoid(x2 @ w.T + b)
    assert z2.shape == (B2, 1)
    assert jnp.allclose(z2, z2_ref, atol=2e-5, rtol=1e-4)

    print("KERNEL_OK")
</pallas_src>

<mosaic_0001>
module attributes {stable_mosaic.version = 11 : i64} {
  func.func @_linear_sigmoid_kernel(%arg0: i32, %arg1: memref<8x10000xf32, #tpu.memory_space<vmem>>, %arg2: memref<1x10000xf32, #tpu.memory_space<vmem>>, %arg3: memref<1x1xf32, #tpu.memory_space<smem>>, %arg4: memref<8x1xf32, #tpu.memory_space<vmem>>) attributes {dimension_semantics = [#tpu.dimension_semantics<parallel>], iteration_bounds = array<i64: 1>, scalar_prefetch = 0 : i64, scratch_operands = 0 : i64, tpu.core_type = #tpu.core_type<tc>, window_params = [{transform_indices = @transform_0, window_bounds = array<i64: 8, 10000>}, {pipeline_mode = #tpu.pipeline_mode<synchronous>, transform_indices = @transform_1, window_bounds = array<i64: 1, 10000>}, {transform_indices = @transform_2, window_bounds = array<i64: 1, 1>}, {transform_indices = @transform_3, window_bounds = array<i64: 8, 1>}]} {
    %c0 = arith.constant 0 : index
    %c0_0 = arith.constant 0 : index
    %0 = vector.load %arg1[%c0, %c0_0] : memref<8x10000xf32, #tpu.memory_space<vmem>>, vector<8x10000xf32>
    %c0_1 = arith.constant 0 : index
    %c0_2 = arith.constant 0 : index
    %1 = vector.load %arg2[%c0_1, %c0_2] : memref<1x10000xf32, #tpu.memory_space<vmem>>, vector<1x10000xf32>
    %2 = vector.broadcast %1 : vector<1x10000xf32> to vector<8x10000xf32>
    %3 = arith.mulf %0, %2 : vector<8x10000xf32>
    %cst = arith.constant dense<0.000000e+00> : vector<8xf32>
    %4 = vector.multi_reduction <add>, %3, %cst [1] : vector<8x10000xf32> to vector<8xf32>
    %5 = vector.shape_cast %4 : vector<8xf32> to vector<8x1xf32>
    %c0_3 = arith.constant 0 : index
    %c0_4 = arith.constant 0 : index
    %6 = memref.load %arg3[%c0_3, %c0_4] : memref<1x1xf32, #tpu.memory_space<smem>>
    %7 = vector.broadcast %6 : f32 to vector<8x1xf32>
    %8 = arith.addf %5, %7 : vector<8x1xf32>
    %9 = arith.negf %8 : vector<8x1xf32>
    %10 = math.exp %9 : vector<8x1xf32>
    %cst_5 = arith.constant 1.000000e+00 : f32
    %11 = vector.broadcast %cst_5 : f32 to vector<8x1xf32>
    %12 = arith.addf %11, %10 : vector<8x1xf32>
    %13 = arith.divf %11, %12 : vector<8x1xf32>
    %c0_6 = arith.constant 0 : index
    %c0_7 = arith.constant 0 : index
    %14 = vector.load %arg4[%c0_6, %c0_7] : memref<8x1xf32, #tpu.memory_space<vmem>>, vector<8x1xf32>
    tpu.vector_store %arg4[%c0_6, %c0_7], %13 {strides = array<i32>} : memref<8x1xf32, #tpu.memory_space<vmem>>, vector<8x1xf32>,
    return
  }
  func.func @transform_0(%arg0: i32) -> (i32, i32) {
    %c0_i32 = arith.constant 0 : i32
    %c0_i32_0 = arith.constant 0 : i32
    return %arg0, %c0_i32 : i32, i32
  }
  func.func @transform_1(%arg0: i32) -> (i32, i32) {
    %c0_i32 = arith.constant 0 : i32
    %c0_i32_0 = arith.constant 0 : i32
    %c0_i32_1 = arith.constant 0 : i32
    return %c0_i32, %c0_i32_0 : i32, i32
  }
  func.func @transform_2(%arg0: i32) -> (i32, i32) {
    %c0_i32 = arith.constant 0 : i32
    %c0_i32_0 = arith.constant 0 : i32
    %c0_i32_1 = arith.constant 0 : i32
    return %c0_i32, %c0_i32_0 : i32, i32
  }
  func.func @transform_3(%arg0: i32) -> (i32, i32) {
    %c0_i32 = arith.constant 0 : i32
    %c0_i32_0 = arith.constant 0 : i32
    return %arg0, %c0_i32 : i32, i32
  }
}

</mosaic_0001>

<bundles_post_ra>
// kernel: discriminator_forward.1
= control target key start
LH: loop header
LB: loop body
LE: loop exit
PB: predicated region body
PF: predicated region fallthrough
CT: control target
= control target key end

     0   :  { %v114_v0 = vlaneseq  ;;  %vm665_vm0 = vcmask 130048   ;;  %vm679_vm1 = vcmask 7168   ;;  %s1420_s1 = inlined_call_operand.vmem [shape: f32[1,10000], index: 1, kind: input, shape index: {}]   ;;  %s1421_s0 = inlined_call_operand.vmem [shape: f32[8,10000], index: 0, kind: input, shape index: {}]   ;;  %s1422_s2 = inlined_call_operand.<no memory space> [shape: f32[1,1], index: 2, kind: input, shape index: {}]   ;;  %s1423_s3 = inlined_call_operand.vmem [shape: f32[8,1], index: 3, kind: output, shape index: {}]  }
   0x1   :  { %v713_v2 = vld [vmem:[%s1420_s1 + $0x28] sm:$0xff]  ;;  %v726_v7 = vld [vmem:[%s1420_s1 + $0x30] sm:$0xff]  ;;  %v747_v16 = vld [vmem:[%s1420_s1 + $0x38] sm:$0xff] }
   0x2   :  { %v115_v1 = vshrl.u32 %v114_v0, 7  ;;  %v768_v25 = vld [vmem:[%s1420_s1 + $0x40] sm:$0xff]  ;;  %v789_v34 = vld [vmem:[%s1420_s1 + $0x48] sm:$0x7f]  ;;  %v17_v57 = vld [vmem:[%s1421_s0 + $0x10] sm:$0xff] }
   0x3   :  { %v832_v54 = vld [vmem:[%s1420_s1] sm:$0xff]  ;;  %v16_v56 = vld [vmem:[%s1421_s0 + $0x8] sm:$0xff]  ;;  %v49_v59 = vld [vmem:[%s1421_s0 + $0x110] sm:$0xff] }
   0x4   :  { %v715_v3 = vsub.s32 0, %v115_v1  ;;  %v717_v4 = vsub.s32 1, %v115_v1  ;;  %v719_v5 = vsub.s32 2, %v115_v1  ;;  %v721_v6 = vsub.s32 3, %v115_v1  ;;  %v15_v55 = vld [vmem:[%s1421_s0] sm:$0xff]  ;;  %v48_v58 = vld [vmem:[%s1421_s0 + $0x108] sm:$0xff] }
   0x5   :  { %v728_v8 = vsub.s32 4, %v115_v1  ;;  %v730_v9 = vsub.s32 5, %v115_v1  ;;  %v732_v10 = vsub.s32 6, %v115_v1  ;;  %v734_v11 = vsub.s32 7, %v115_v1  ;;  %v50_v60 = vld [vmem:[%s1421_s0 + $0x118] sm:$0xff]  ;;  %v51_v61 = vld [vmem:[%s1421_s0 + $0x120] sm:$0xff] }
   0x6   :  { %v277_v12 = vrot.slane %v713_v2, %v715_v3  ;;  %v281_v13 = vrot.slane %v713_v2, %v717_v4  ;;  %v285_v14 = vrot.slane %v713_v2, %v719_v5  ;;  %v289_v15 = vrot.slane %v713_v2, %v721_v6  ;;  %v858_v62 = vld [vmem:[%s1420_s1 + $0x20] sm:$0xff]  ;;  %v52_v53 = vld [vmem:[%s1421_s0 + $0x128] sm:$0xff]  ;;  %v53_v52 = vld [vmem:[%s1421_s0 + $0x130] sm:$0xff] }
   0x7   :  { %v293_v17 = vrot.slane %v713_v2, %v728_v8  ;;  %v297_v18 = vrot.slane %v713_v2, %v730_v9  ;;  %v301_v19 = vrot.slane %v713_v2, %v732_v10  ;;  %v305_v20 = vrot.slane %v713_v2, %v734_v11  ;;  %v54_v51 = vld [vmem:[%s1421_s0 + $0x138] sm:$0xff]  ;;  %v55_v50 = vld [vmem:[%s1421_s0 + $0x140] sm:$0xff]  ;;  %v56_v45 = vld [vmem:[%s1421_s0 + $0x148] sm:$0xff] }
   0x8   :  { %v117_v63 = vrot.slane %v832_v54, %v715_v3  ;;  %v121_v0 = vrot.slane %v832_v54, %v717_v4  ;;  %v125_v1 = vrot.slane %v832_v54, %v719_v5  ;;  %v249_v49 = vrot.slane %v858_v62, %v717_v4  ;;  %v57_v44 = vld [vmem:[%s1421_s0 + $0x150] sm:$0xff]  ;;  %v58_v43 = vld [vmem:[%s1421_s0 + $0x158] sm:$0xff]  ;;  %v59_v42 = vld [vmem:[%s1421_s0 + $0x160] sm:$0xff] }
   0x9   :  { %v253_v48 = vrot.slane %v858_v62, %v719_v5  ;;  %v257_v47 = vrot.slane %v858_v62, %v721_v6  ;;  %v261_v46 = vrot.slane %v858_v62, %v728_v8  ;;  %v265_v41 = vrot.slane %v858_v62, %v730_v9  ;;  %v60_v38 = vld [vmem:[%s1421_s0 + $0x168] sm:$0xff]  ;;  %v61_v37 = vld [vmem:[%s1421_s0 + $0x170] sm:$0xff]  ;;  %v62_v36 = vld [vmem:[%s1421_s0 + $0x178] sm:$0xff] }
   0xa   :  { %v269_v40 = vrot.slane %v858_v62, %v732_v10  ;;  %v273_v39 = vrot.slane %v858_v62, %v734_v11  ;;  %v63_v35 = vld [vmem:[%s1421_s0 + $0x180] sm:$0xff]  ;;  %v64_v31 = vld [vmem:[%s1421_s0 + $0x188] sm:$0xff]  ;;  %v65_v30 = vld [vmem:[%s1421_s0 + $0x190] sm:$0xff]  ;;  %v934_v32 = vmul.f32 %v117_v63, %v15_v55  ;;  %v936_v27 = vmul.f32 %v121_v0, %v16_v56 }
   0xb   :  { %v66_v29 = vld [vmem:[%s1421_s0 + $0x198] sm:$0xff]  ;;  %v67_v28 = vld [vmem:[%s1421_s0 + $0x1a0] sm:$0xff]  ;;  %v938_v26 = vmul.f32 %v125_v1, %v17_v57  ;;  %v68_v24 = vld [vmem:[%s1421_s0 + $0x1a8] sm:$0xff]  ;;  %v949_v21 = vmul.f32 %v249_v49, %v48_v58  ;;  %v951_v55 = vmul.f32 %v253_v48, %v49_v59  ;;  %v953_v56 = vmul.f32 %v257_v47, %v50_v60 }
   0xc   :  { %v69_v23 = vld [vmem:[%s1421_s0 + $0x1b0] sm:$0xff]  ;;  %v70_v22 = vld [vmem:[%s1421_s0 + $0x1b8] sm:$0xff]  ;;  %v955_v57 = vmul.f32 %v261_v46, %v51_v61  ;;  %v71_v63 = vld [vmem:[%s1421_s0 + $0x1c0] sm:$0xff]  ;;  %v966_v49 = vmul.f32 %v265_v41, %v52_v53  ;;  %v968_v48 = vmul.f32 %v269_v40, %v53_v52  ;;  %v970_v47 = vmul.f32 %v273_v39, %v54_v51 }
   0xd   :  { %v72_v0 = vld [vmem:[%s1421_s0 + $0x1c8] sm:$0xff]  ;;  %v73_v1 = vld [vmem:[%s1421_s0 + $0x1d0] sm:$0xff]  ;;  %v975_v46 = vmul.f32 %v277_v12, %v55_v50  ;;  %v74_v58 = vld [vmem:[%s1421_s0 + $0x1d8] sm:$0xff]  ;;  %v989_v39 = vmul.f32 %v281_v13, %v56_v45  ;;  %v994_v12 = vmul.f32 %v285_v14, %v57_v44  ;;  %v999_v41 = vmul.f32 %v289_v15, %v58_v43 }
   0xe   :  { %v75_v59 = vld [vmem:[%s1421_s0 + $0x1e0] sm:$0xff]  ;;  %v76_v40 = vld [vmem:[%s1421_s0 + $0x1e8] sm:$0xff]  ;;  %v1004_v50 = vmul.f32 %v293_v17, %v59_v42  ;;  %v77_v13 = vld [vmem:[%s1421_s0 + $0x1f0] sm:$0xff]  ;;  %v1018_v15 = vmul.f32 %v297_v18, %v60_v38  ;;  %v1023_v17 = vmul.f32 %v301_v19, %v61_v37  ;;  %v1028_v42 = vmul.f32 %v305_v20, %v62_v36 }
   0xf   :  { %v78_v45 = vld [vmem:[%s1421_s0 + $0x1f8] sm:$0xff]  ;;  %v79_v14 = vld [vmem:[%s1421_s0 + $0x200] sm:$0xff]  ;;  %v1424_v43 = vrot.slane %v726_v7, %v715_v3  ;;  %v80_v18 = vld [vmem:[%s1421_s0 + $0x208] sm:$0xff]  ;;  %v1425_v2 = vrot.slane %v726_v7, %v717_v4  ;;  %v1427_v37 = vrot.slane %v726_v7, %v721_v6  ;;  %v1428_v52 = vrot.slane %v726_v7, %v728_v8 }
  0x10   :  { %v81_v38 = vld [vmem:[%s1421_s0 + $0x210] sm:$0xff]  ;;  %v82_v19 = vld [vmem:[%s1421_s0 + $0x218] sm:$0xff]  ;;  %v84_v60 = vld [vmem:[%s1421_s0 + $0x228] sm:$0xff]  ;;  %v1439_v33 = vrot.slane %v747_v16, %v728_v8 }
  0x11   :  { %v1033_v44 = vmul.f32 %v1424_v43, %v63_v35  ;;  %v1047_v20 = vmul.f32 %v1425_v2, %v64_v31  ;;  %v1426_v35 = vrot.slane %v726_v7, %v719_v5  ;;  %v1057_v51 = vmul.f32 %v1427_v37, %v66_v29  ;;  %v83_v31 = vld [vmem:[%s1421_s0 + $0x220] sm:$0xff] }
  0x12   :  { %v1062_v53 = vmul.f32 %v1428_v52, %v67_v28  ;;  %v1429_v29 = vrot.slane %v726_v7, %v730_v9  ;;  %v1430_v28 = vrot.slane %v726_v7, %v732_v10  ;;  %v1431_v2 = vrot.slane %v726_v7, %v734_v11 }
  0x13   :  { %v1052_v36 = vmul.f32 %v1426_v35, %v65_v30  ;;  %v85_v30 = vld [vmem:[%s1421_s0 + $0x230] sm:$0xff]  ;;  %v1432_v37 = vrot.slane %v747_v16, %v715_v3  ;;  %v1434_v7 = vrot.slane %v747_v16, %v717_v4 }
  0x14   :  { %v1076_v61 = vmul.f32 %v1429_v29, %v68_v24  ;;  %v1081_v43 = vmul.f32 %v1430_v28, %v69_v23  ;;  %v1086_v35 = vmul.f32 %v1431_v2, %v70_v22  ;;  %v86_v24 = vld [vmem:[%s1421_s0 + $0x238] sm:$0xff]  ;;  %v87_v29 = vld [vmem:[%s1421_s0 + $0x240] sm:$0xff]  ;;  %v88_v23 = vld [vmem:[%s1421_s0 + $0x248] sm:$0xff]  ;;  %v1437_v2 = vrot.slane %v747_v16, %v721_v6 }
  0x15   :  { %v1091_v52 = vmul.f32 %v1432_v37, %v71_v63  ;;  %v1105_v22 = vmul.f32 %v1434_v7, %v72_v0  ;;  %v1435_v63 = vrot.slane %v747_v16, %v719_v5  ;;  %v89_v0 = vld [vmem:[%s1421_s0 + $0x250] sm:$0xff]  ;;  %v90_v7 = vld [vmem:[%s1421_s0 + $0x258] sm:$0xff] }
  0x16   :  { %v1115_v37 = vmul.f32 %v1437_v2, %v74_v58  ;;  %v1441_v58 = vrot.slane %v747_v16, %v730_v9  ;;  %v1444_v2 = vrot.slane %v747_v16, %v734_v11 }
  0x17   :  { %1433 = vst [vmem:[#allocation3_spill] sm:$0xff] %v1091_v52  ;;  %v1110_v28 = vmul.f32 %v1435_v63, %v73_v1  ;;  %v1120_v52 = vmul.f32 %v1439_v33, %v75_v59  ;;  %v91_v1 = vld [vmem:[%s1421_s0 + $0x260] sm:$0xff]  ;;  %v1442_v33 = vrot.slane %v747_v16, %v732_v10  ;;  %v1448_v16 = vrot.slane %v768_v25, %v717_v4 }
  0x18   :  { %1438 = vst [vmem:[#allocation5_spill] sm:$0xff] %v1115_v37  ;;  %v1134_v63 = vmul.f32 %v1441_v58, %v76_v40  ;;  %v1446_v37 = vrot.slane %v768_v25, %v715_v3  ;;  %v18_v40 = vld [vmem:[%s1421_s0 + $0x18] sm:$0xff]  ;;  %v92_v58 = vld [vmem:[%s1421_s0 + $0x268] sm:$0xff] }
  0x19   :  { %1436 = vst [vmem:[#allocation4_spill] sm:$0xff] %v1110_v28  ;;  %1440 = vst [vmem:[#allocation6_spill] sm:$0xff] %v1120_v52  ;;  %v1139_v59 = vmul.f32 %v1442_v33, %v77_v13  ;;  %v1144_v52 = vmul.f32 %v1444_v2, %v78_v45  ;;  %v93_v13 = vld [vmem:[%s1421_s0 + $0x270] sm:$0xff]  ;;  %v1163_v45 = vmul.f32 %v1448_v16, %v80_v18 }
  0x1a   :  { %v1149_v28 = vmul.f32 %v1446_v37, %v79_v14  ;;  %v1449_v14 = vrot.slane %v768_v25, %v719_v5  ;;  %v1450_v33 = vrot.slane %v768_v25, %v721_v6  ;;  %v1453_v16 = vrot.slane %v768_v25, %v732_v10 }
  0x1b   :  { %1443 = vst [vmem:[#allocation7_spill] sm:$0xff] %v1139_v59  ;;  %1445 = vst [vmem:[#allocation8_spill] sm:$0xff] %v1144_v52  ;;  %v1452_v59 = vrot.slane %v768_v25, %v730_v9 }
  0x1c   :  { %1447 = vst [vmem:[#allocation9_spill] sm:$0xff] %v1149_v28  ;;  %v1168_v37 = vmul.f32 %v1449_v14, %v81_v38  ;;  %v1173_v2 = vmul.f32 %v1450_v33, %v82_v19  ;;  %v1451_v28 = vrot.slane %v768_v25, %v728_v8  ;;  %v1188_v38 = vmul.f32 %v1453_v16, %v85_v30 }
  0x1d   :  { %v1183_v18 = vmul.f32 %v1452_v59, %v84_v60  ;;  %v1454_v14 = vrot.slane %v768_v25, %v734_v11  ;;  %v1455_v33 = vrot.slane %v789_v34, %v715_v3  ;;  %v19_v60 = vld [vmem:[%s1421_s0 + $0x20] sm:$0xff]  ;;  %v1458_v30 = vrot.slane %v789_v34, %v719_v5 }
  0x1e   :  { %v1178_v52 = vmul.f32 %v1451_v28, %v83_v31  ;;  %v1456_v28 = vrot.slane %v789_v34, %v717_v4 }
  0x1f   :  { %v1193_v19 = vmul.f32 %v1454_v14, %v86_v24  ;;  %v1198_v31 = vmul.f32 %v1455_v33, %v87_v29  ;;  %v1211_v25 = vmul.f32 %v1458_v30, %v89_v0  ;;  %v1459_v24 = vrot.slane %v789_v34, %v721_v6 }
  0x20   :  { %v1206_v59 = vmul.f32 %v1456_v28, %v88_v23  ;;  %v1460_v29 = vrot.slane %v789_v34, %v728_v8  ;;  %v1462_v33 = vrot.slane %v832_v54, %v721_v6  ;;  %v1463_v28 = vrot.slane %v789_v34, %v730_v9 }
  0x21   :  { %v1216_v16 = vmul.f32 %v1459_v24, %v90_v7  ;;  %v1465_v0 = vrot.slane %v789_v34, %v732_v10  ;;  %v588_v7 = vadd.f32 %v936_v27, %v934_v32  ;;  %v1467_v24 = vrot.slane %v832_v54, %v728_v8  ;;  %v21_v34 = vld [vmem:[%s1421_s0 + $0x30] sm:$0xff]  ;;  %v95_v27 = vld [vmem:[%s1420_s1 + $0x8] sm:$0xff] }
  0x22   :  { %1457 = vst [vmem:[#allocation10_spill] sm:$0xff] %v1206_v59  ;;  %v1221_v14 = vmul.f32 %v1460_v29, %v91_v1  ;;  %v512_v23 = vmul.f32 %v1462_v33, %v18_v40  ;;  %v1229_v59 = vmul.f32 %v1463_v28, %v92_v58  ;;  %v20_v1 = vld [vmem:[%s1421_s0 + $0x28] sm:$0xff]  ;;  %v141_v40 = vrot.slane %v832_v54, %v732_v10 }
  0x23   :  { %v1234_v30 = vmul.f32 %v1465_v0, %v93_v13  ;;  %v513_v58 = vmul.f32 %v1467_v24, %v19_v60  ;;  %v589_v29 = vadd.f32 %v588_v7, %v938_v26  ;;  %v145_v32 = vrot.slane %v832_v54, %v734_v11  ;;  %v22_v26 = vld [vmem:[%s1421_s0 + $0x38] sm:$0xff]  ;;  %v23_v24 = vld [vmem:[%s1421_s0 + $0x40] sm:$0xff] }
  0x24   :  { %1461 = vst [vmem:[#allocation11_spill] sm:$0xff] %v1221_v14  ;;  %1464 = vst [vmem:[#allocation12_spill] sm:$0xff] %v1229_v59  ;;  %v1468_v13 = vrot.slane %v832_v54, %v730_v9  ;;  %v149_v60 = vrot.slane %v95_v27, %v715_v3  ;;  %v515_v0 = vmul.f32 %v141_v40, %v21_v34  ;;  %v24_v54 = vld [vmem:[%s1421_s0 + $0x48] sm:$0xff]  ;;  %v25_v40 = vld [vmem:[%s1421_s0 + $0x50] sm:$0xff] }
  0x25   :  { %1466 = vst [vmem:[#allocation13_spill] sm:$0xff] %v1234_v30  ;;  %v590_v28 = vadd.f32 %v589_v29, %v512_v23  ;;  %v153_v59 = vrot.slane %v95_v27, %v717_v4  ;;  %v516_v30 = vmul.f32 %v145_v32, %v22_v26  ;;  %v157_v23 = vrot.slane %v95_v27, %v719_v5  ;;  %v26_v32 = vld [vmem:[%s1421_s0 + $0x58] sm:$0xff] }
  0x26   :  { %v514_v33 = vmul.f32 %v1468_v13, %v20_v1  ;;  %v517_v1 = vmul.f32 %v149_v60, %v23_v24  ;;  %v169_v60 = vrot.slane %v95_v27, %v730_v9 }
  0x27   :  { %v591_v7 = vadd.f32 %v590_v28, %v513_v58  ;;  %v161_v58 = vrot.slane %v95_v27, %v721_v6  ;;  %v518_v34 = vmul.f32 %v153_v59, %v24_v54  ;;  %v519_v28 = vmul.f32 %v157_v23, %v25_v40  ;;  %v28_v59 = vld [vmem:[%s1421_s0 + $0x68] sm:$0xff]  ;;  %v29_v23 = vld [vmem:[%s1421_s0 + $0x70] sm:$0xff] }
  0x28   :  { %v522_v40 = vmul.f32 %v169_v60, %v28_v59 }
  0x29   :  { %v592_v14 = vadd.f32 %v591_v7, %v514_v33  ;;  %v165_v33 = vrot.slane %v95_v27, %v728_v8 }
  0x2b   :  { %v593_v29 = vadd.f32 %v592_v14, %v515_v0  ;;  %v27_v14 = vld [vmem:[%s1421_s0 + $0x60] sm:$0xff]  ;;  %v520_v0 = vmul.f32 %v161_v58, %v26_v32 }
  0x2c   :  { %v521_v24 = vmul.f32 %v165_v33, %v27_v14 }
  0x2d   :  { %v594_v13 = vadd.f32 %v593_v29, %v516_v30  ;;  %v173_v30 = vrot.slane %v95_v27, %v732_v10  ;;  %v177_v29 = vrot.slane %v95_v27, %v734_v11  ;;  %v32_v27 = vld [vmem:[%s1421_s0 + $0x88] sm:$0xff] }
  0x2f   :  { %v595_v26 = vadd.f32 %v594_v13, %v517_v1  ;;  %v96_v1 = vld [vmem:[%s1420_s1 + $0x10] sm:$0xff]  ;;  %v523_v32 = vmul.f32 %v173_v30, %v29_v23 }
  0x30   :  { %v181_v13 = vrot.slane %v96_v1, %v715_v3  ;;  %v189_v60 = vrot.slane %v96_v1, %v719_v5  ;;  %v33_v30 = vld [vmem:[%s1421_s0 + $0x90] sm:$0xff] }
  0x31   :  { %v596_v7 = vadd.f32 %v595_v26, %v518_v34  ;;  %v30_v34 = vld [vmem:[%s1421_s0 + $0x78] sm:$0xff]  ;;  %v185_v26 = vrot.slane %v96_v1, %v717_v4 }
  0x32   :  { %v524_v14 = vmul.f32 %v177_v29, %v30_v34  ;;  %v34_v29 = vld [vmem:[%s1421_s0 + $0x98] sm:$0xff] }
  0x33   :  { %v597_v54 = vadd.f32 %v596_v7, %v519_v28  ;;  %v31_v28 = vld [vmem:[%s1421_s0 + $0x80] sm:$0xff] }
  0x35   :  { %v598_v58 = vadd.f32 %v597_v54, %v520_v0  ;;  %v525_v0 = vmul.f32 %v181_v13, %v31_v28  ;;  %v526_v54 = vmul.f32 %v185_v26, %v32_v27  ;;  %v35_v13 = vld [vmem:[%s1421_s0 + $0xa0] sm:$0xff]  ;;  %v36_v26 = vld [vmem:[%s1421_s0 + $0xa8] sm:$0xff] }
  0x37   :  { %v599_v33 = vadd.f32 %v598_v58, %v521_v24  ;;  %v193_v24 = vrot.slane %v96_v1, %v721_v6  ;;  %v527_v58 = vmul.f32 %v189_v60, %v33_v30  ;;  %v37_v60 = vld [vmem:[%s1421_s0 + $0xb0] sm:$0xff] }
  0x39   :  { %v600_v7 = vadd.f32 %v599_v33, %v522_v40  ;;  %v197_v40 = vrot.slane %v96_v1, %v728_v8  ;;  %v528_v33 = vmul.f32 %v193_v24, %v34_v29 }
  0x3b   :  { %v601_v59 = vadd.f32 %v600_v7, %v523_v32  ;;  %v201_v32 = vrot.slane %v96_v1, %v730_v9  ;;  %v529_v7 = vmul.f32 %v197_v40, %v35_v13 }
  0x3d   :  { %v602_v23 = vadd.f32 %v601_v59, %v524_v14  ;;  %v205_v14 = vrot.slane %v96_v1, %v732_v10  ;;  %v209_v59 = vrot.slane %v96_v1, %v734_v11  ;;  %v530_v30 = vmul.f32 %v201_v32, %v36_v26  ;;  %v40_v1 = vld [vmem:[%s1421_s0 + $0xc8] sm:$0xff] }
  0x3f   :  { %v603_v34 = vadd.f32 %v602_v23, %v525_v0  ;;  %v97_v0 = vld [vmem:[%s1420_s1 + $0x18] sm:$0xff]  ;;  %v531_v29 = vmul.f32 %v205_v14, %v37_v60  ;;  %v41_v14 = vld [vmem:[%s1421_s0 + $0xd0] sm:$0xff] }
  0x40   :  { %v213_v23 = vrot.slane %v97_v0, %v715_v3  ;;  %v221_v32 = vrot.slane %v97_v0, %v719_v5  ;;  %v43_v5 = vld [vmem:[%s1421_s0 + $0xe0] sm:$0xff] }
  0x41   :  { %v604_v28 = vadd.f32 %v603_v34, %v526_v54  ;;  %v38_v54 = vld [vmem:[%s1421_s0 + $0xb8] sm:$0xff]  ;;  %v217_v34 = vrot.slane %v97_v0, %v717_v4 }
  0x42   :  { %v532_v13 = vmul.f32 %v209_v59, %v38_v54  ;;  %v42_v4 = vld [vmem:[%s1421_s0 + $0xd8] sm:$0xff]  ;;  %v229_v59 = vrot.slane %v97_v0, %v728_v8  ;;  %v233_v54 = vrot.slane %v97_v0, %v730_v9  ;;  %v45_v8 = vld [vmem:[%s1421_s0 + $0xf0] sm:$0xff] }
  0x43   :  { %v605_v27 = vadd.f32 %v604_v28, %v527_v58  ;;  %v39_v58 = vld [vmem:[%s1421_s0 + $0xc0] sm:$0xff]  ;;  %v46_v9 = vld [vmem:[%s1421_s0 + $0xf8] sm:$0xff] }
  0x45   :  { %v606_v24 = vadd.f32 %v605_v27, %v528_v33  ;;  %v533_v33 = vmul.f32 %v213_v23, %v39_v58  ;;  %v534_v27 = vmul.f32 %v217_v34, %v40_v1  ;;  %v537_v58 = vmul.f32 %v229_v59, %v43_v5 }
  0x47   :  { %v607_v40 = vadd.f32 %v606_v24, %v529_v7  ;;  %v225_v7 = vrot.slane %v97_v0, %v721_v6  ;;  %v44_v6 = vld [vmem:[%s1421_s0 + $0xe8] sm:$0xff] }
  0x49   :  { %v608_v28 = vadd.f32 %v607_v40, %v530_v30  ;;  %v535_v30 = vmul.f32 %v221_v32, %v41_v14  ;;  %v536_v23 = vmul.f32 %v225_v7, %v42_v4  ;;  %v237_v40 = vrot.slane %v97_v0, %v732_v10  ;;  %v47_v10 = vld [vmem:[%s1421_s0 + $0x100] sm:$0xff] }
  0x4a   :  { %v245_v32 = vrot.slane %v858_v62, %v715_v3 }
  0x4b   :  { %v609_v26 = vadd.f32 %v608_v28, %v531_v29  ;;  %v538_v28 = vmul.f32 %v233_v54, %v44_v6  ;;  %v1469_v6 = vld [vmem:[#allocation3_spill] sm:$0xff] }
  0x4d   :  { %v610_v60 = vadd.f32 %v609_v26, %v532_v13  ;;  %v241_v13 = vrot.slane %v97_v0, %v734_v11 }
  0x4f   :  { %v611_v24 = vadd.f32 %v610_v60, %v533_v33  ;;  %v539_v33 = vmul.f32 %v237_v40, %v45_v8  ;;  %v540_v14 = vmul.f32 %v241_v13, %v46_v9  ;;  %v1470_v40 = vld [vmem:[#allocation4_spill] sm:$0xff]  ;;  %v1473_v8 = vld [vmem:[#allocation7_spill] sm:$0xff] }
  0x50   :  { %v1474_v13 = vld [vmem:[#allocation8_spill] sm:$0xff] }
  0x51   :  { %v612_v29 = vadd.f32 %v611_v24, %v534_v27  ;;  %v541_v27 = vmul.f32 %v245_v32, %v47_v10  ;;  %v1476_v10 = vld [vmem:[#allocation10_spill] sm:$0xff] }
  0x53   :  { %v613_v34 = vadd.f32 %v612_v29, %v535_v30 }
  0x55   :  { %v614_v1 = vadd.f32 %v613_v34, %v536_v23  ;;  %v1472_v34 = vld [vmem:[#allocation6_spill] sm:$0xff] }
  0x57   :  { %v615_v26 = vadd.f32 %v614_v1, %v537_v58  ;;  %v1471_v58 = vld [vmem:[#allocation5_spill] sm:$0xff] }
  0x59   :  { %v616_v7 = vadd.f32 %v615_v26, %v538_v28  ;;  %v1475_v28 = vld [vmem:[#allocation9_spill] sm:$0xff] }
  0x5b   :  { %v617_v60 = vadd.f32 %v616_v7, %v539_v33 }
  0x5d   :  { %v618_v11 = vadd.f32 %v617_v60, %v540_v14 }
  0x5f   :  { %v619_v0 = vadd.f32 %v618_v11, %v541_v27 }
  0x61   :  { %v620_v4 = vadd.f32 %v619_v0, %v949_v21 }
  0x63   :  { %v621_v59 = vadd.f32 %v620_v4, %v951_v55 }
  0x65   :  { %v622_v30 = vadd.f32 %v621_v59, %v953_v56 }
  0x67   :  { %v623_v3 = vadd.f32 %v622_v30, %v955_v57 }
  0x69   :  { %v624_v62 = vadd.f32 %v623_v3, %v966_v49 }
  0x6b   :  { %v625_v24 = vadd.f32 %v624_v62, %v968_v48 }
  0x6d   :  { %v626_v5 = vadd.f32 %v625_v24, %v970_v47 }
  0x6f   :  { %v627_v54 = vadd.f32 %v626_v5, %v975_v46 }
  0x71   :  { %v628_v23 = vadd.f32 %v627_v54, %v989_v39 }
  0x73   :  { %v629_v29 = vadd.f32 %v628_v23, %v994_v12 }
  0x75   :  { %v630_v21 = vadd.f32 %v629_v29, %v999_v41 }
  0x77   :  { %v631_v55 = vadd.f32 %v630_v21, %v1004_v50 }
  0x79   :  { %v632_v56 = vadd.f32 %v631_v55, %v1018_v15 }
  0x7b   :  { %v633_v57 = vadd.f32 %v632_v56, %v1023_v17 }
  0x7d   :  { %v634_v49 = vadd.f32 %v633_v57, %v1028_v42 }
  0x7f   :  { %v635_v48 = vadd.f32 %v634_v49, %v1033_v44 }
  0x81   :  { %v636_v47 = vadd.f32 %v635_v48, %v1047_v20 }
  0x83   :  { %v637_v46 = vadd.f32 %v636_v47, %v1052_v36 }
  0x85   :  { %v638_v39 = vadd.f32 %v637_v46, %v1057_v51 }
  0x87   :  { %v639_v12 = vadd.f32 %v638_v39, %v1062_v53 }
  0x89   :  { %v640_v41 = vadd.f32 %v639_v12, %v1076_v61 }
  0x8b   :  { %v641_v50 = vadd.f32 %v640_v41, %v1081_v43 }
  0x8d   :  { %v642_v15 = vadd.f32 %v641_v50, %v1086_v35 }
  0x8f   :  { %v643_v17 = vadd.f32 %v642_v15, %v1469_v6 }
  0x91   :  { %v644_v42 = vadd.f32 %v643_v17, %v1105_v22 }
  0x93   :  { %v645_v44 = vadd.f32 %v644_v42, %v1470_v40 }
  0x95   :  { %v646_v20 = vadd.f32 %v645_v44, %v1471_v58 }
  0x97   :  { %v647_v36 = vadd.f32 %v646_v20, %v1472_v34 }
  0x99   :  { %v648_v51 = vadd.f32 %v647_v36, %v1134_v63 }
  0x9b   :  { %v649_v53 = vadd.f32 %v648_v51, %v1473_v8 }
  0x9d   :  { %v650_v61 = vadd.f32 %v649_v53, %v1474_v13 }
  0x9f   :  { %v651_v43 = vadd.f32 %v650_v61, %v1475_v28 }
  0xa1   :  { %v652_v35 = vadd.f32 %v651_v43, %v1163_v45 }
  0xa3   :  { %v653_v1 = vadd.f32 %v652_v35, %v1168_v37  ;;  %v1477_v37 = vld [vmem:[#allocation11_spill] sm:$0xff] }
  0xa5   :  { %v654_v22 = vadd.f32 %v653_v1, %v1173_v2  ;;  %v1478_v2 = vld [vmem:[#allocation13_spill] sm:$0xff] }
  0xa6   :  { %v666_v60 = vsel %vm665_vm0, %v1478_v2, 0.0 }
  0xa7   :  { %v655_v9 = vadd.f32 %v654_v22, %v1178_v52  ;;  %v1479_v52 = vld [vmem:[#allocation12_spill] sm:$0xff] }
  0xa9   :  { %v656_v32 = vadd.f32 %v655_v9, %v1183_v18 }
  0xab   :  { %v657_v33 = vadd.f32 %v656_v32, %v1188_v38  ;;  %v671_v38 = vstv %s1422_s2 }
  0xad   :  { %v658_v63 = vadd.f32 %v657_v33, %v1193_v19 }
  0xaf   :  { %v659_v26 = vadd.f32 %v658_v63, %v1198_v31 }
  0xb1   :  { %v660_v14 = vadd.f32 %v659_v26, %v1476_v10 }
  0xb3   :  { %v661_v7 = vadd.f32 %v660_v14, %v1211_v25 }
  0xb5   :  { %v662_v45 = vadd.f32 %v661_v7, %v1216_v16 }
  0xb7   :  { %v663_v27 = vadd.f32 %v662_v45, %v1477_v37 }
  0xb9   :  { %v664_v11 = vadd.f32 %v663_v27, %v1479_v52 }
  0xbb   :  { %v667_v18 = vadd.f32 %v666_v60, %v664_v11 }
  0xbd   :  { %668 = vadd.xlane.f32.xlu0 %v667_v18 }
 0x146   :  { %v669_v19 = vpop.xlane.xlu0 %668 }
 0x147   :  { %v672_v31 = vadd.f32 %v671_v38, %v669_v19 }
 0x149   :  { %v685_v0 = vmul.f32 -1.442695, %v672_v31 }
 0x14b   :  { %686 = vpow2.f32 %v685_v0 }
 0x158   :  { %v687_v25 = vpop.eup %686 }
 0x159   :  { %v676_v4 = vadd.f32 1.0, %v687_v25 }
 0x15b   :  { %688 = vrcp.f32 %v676_v4 }
 0x168   :  { %v689_v16 = vpop.eup %688 }
 0x169   :  { %680 = vst.msk [vmem:[%s1423_s3] sm:$0xff] %vm679_vm1, %v689_v16 }

</bundles_post_ra>
